<compile_context>
chip_gen: v7x
topology: tpu7x:2x2x1
jax: 0.10.0
libtpu: 0.0.40
codegen_flags: <defaults>
</compile_context>

<pallas_src>
import jax
import jax.numpy as jnp
from jax.experimental import pallas as pl
from jax.experimental.pallas import tpu as pltpu

_LANE = 128


def _round_up(n, m):
    return ((n + m - 1) // m) * m


def qnet_kernel(x_ref, w1_ref, b1_ref, w2_ref, b2_ref, o_ref):
    # Layer 1: x @ W1 (MXU, f32 accumulate) + b1, ReLU -- all in f32.
    h = jnp.dot(x_ref[...], w1_ref[...], preferred_element_type=jnp.float32)
    h = jnp.maximum(h + b1_ref[...], 0.0)
    # Layer 2: cast h to the weight dtype only for the MXU feed; accumulate f32.
    out = jnp.dot(h.astype(w2_ref.dtype), w2_ref[...],
                  preferred_element_type=jnp.float32)
    out = out + b2_ref[...]
    o_ref[...] = out.astype(o_ref.dtype)


def prepare_params(w1, b1, w2, b2, *, compute_dtype=None):
    """One-time parameter prep: pad hidden/output dims to multiples of 128.

    w1: (input_size, hidden)   b1: (hidden,) or (1, hidden)
    w2: (hidden, output)       b2: (output,) or (1, output)
    compute_dtype: optional low-precision dtype (e.g. jnp.bfloat16) for the
    MXU feeds on v6e/v7x.  Biases stay float32.  K (input dim) is NOT padded.
    """
    K, H = w1.shape
    O = w2.shape[1]
    Hp, Op = _round_up(H, _LANE), _round_up(O, _LANE)
    wdt = compute_dtype if compute_dtype is not None else w1.dtype
    w1p = jnp.pad(jnp.asarray(w1, wdt), ((0, 0), (0, Hp - H)))
    w2p = jnp.pad(jnp.asarray(w2, wdt), ((0, Hp - H), (0, Op - O)))
    b1p = jnp.pad(jnp.asarray(b1, jnp.float32).reshape(1, H),
                  ((0, 0), (0, Hp - H)))
    b2p = jnp.pad(jnp.asarray(b2, jnp.float32).reshape(1, O),
                  ((0, 0), (0, Op - O)))
    return {"w1": w1p, "b1": b1p, "w2": w2p, "b2": b2p,
            "in_features": K, "out_features": O,
            "compute_dtype": compute_dtype}


def _vmem_cap_bytes():
    """75% of physical VMEM (v5e/v6e -> ~96 MiB, v7x -> ~48 MiB)."""
    default = 64 * 1024 * 1024
    try:
        info = pltpu.get_tpu_info()
        phys = int(getattr(info, "vmem_capacity_bytes", default))
    except Exception:
        phys = default
    return (phys * 3) // 4


def linear_qnet_forward(x, params, *, batch_tile=512):
    """Forward pass of Linear_QNet using pre-padded params from prepare_params.

    x: (B, input_size) or (input_size,). Output dtype follows x's dtype.
    """
    squeeze = x.ndim == 1
    if squeeze:
        x = x[None, :]
    B, K = x.shape
    w1p, b1p, w2p, b2p = params["w1"], params["b1"], params["w2"], params["b2"]
    assert K == params["in_features"], "x feature dim does not match params"
    Hp, Op = w1p.shape[1], w2p.shape[1]
    O = params["out_features"]
    out_dtype = x.dtype

    cdt = params["compute_dtype"]
    if cdt is not None and x.dtype != cdt:
        x = x.astype(cdt)

    # Batch tile: sublane-aligned; clamp so the grid has >= 2 steps when B
    # allows it (v7x megacore sharding of the "parallel" axis).
    sublane = 16 if x.dtype == jnp.bfloat16 else 8
    tb = max(sublane, min(batch_tile, _round_up(B, sublane)))
    half = max(sublane, _round_up(pl.cdiv(B, 2), sublane))
    tb = _round_up(min(tb, half), sublane)
    Bp = _round_up(B, tb)

    xp = x if Bp == B else jnp.pad(x, ((0, Bp - B), (0, 0)))

    grid = (Bp // tb,)

    x_isz = jnp.dtype(x.dtype).itemsize
    o_isz = jnp.dtype(out_dtype).itemsize
    w_isz = jnp.dtype(w1p.dtype).itemsize
    # Double-buffered x/out tiles + resident weights/biases + f32 hidden temp.
    vmem_bytes = (2 * tb * K * x_isz + 2 * tb * Op * o_isz
                  + (K * Hp + Hp * Op) * w_isz
                  + (Hp + Op) * 4 + tb * Hp * 4)
    vmem_limit = min(max(int(vmem_bytes * 2), 16 * 1024 * 1024),
                     _vmem_cap_bytes())

    cost = pl.CostEstimate(
        flops=2 * Bp * (K * Hp + Hp * Op),
        transcendentals=0,
        bytes_accessed=(Bp * K * x_isz + Bp * Op * o_isz
                        + (K * Hp + Hp * Op) * w_isz + (Hp + Op) * 4),
    )

    out_padded = pl.pallas_call(
        qnet_kernel,
        out_shape=jax.ShapeDtypeStruct((Bp, Op), out_dtype),
        grid=grid,
        in_specs=[
            pl.BlockSpec((tb, K), lambda i: (i, 0)),    # x: streamed, real K
            pl.BlockSpec((K, Hp), lambda i: (0, 0)),    # W1: resident
            pl.BlockSpec((1, Hp), lambda i: (0, 0)),    # b1: resident (f32)
            pl.BlockSpec((Hp, Op), lambda i: (0, 0)),   # W2: resident
            pl.BlockSpec((1, Op), lambda i: (0, 0)),    # b2: resident (f32)
        ],
        out_specs=pl.BlockSpec((tb, Op), lambda i: (i, 0)),
        compiler_params=pltpu.CompilerParams(
            dimension_semantics=("parallel",),
            vmem_limit_bytes=vmem_limit,
        ),
        cost_estimate=cost,
    )(xp, w1p, b1p, w2p, b2p)

    out = out_padded[:B, :O]
    if squeeze:
        out = out[0]
    return out


def linear_qnet_apply(x, w1, b1, w2, b2, **kwargs):
    """Convenience one-shot path (pads params per call; prefer prepare_params)."""
    return linear_qnet_forward(x, prepare_params(w1, b1, w2, b2), **kwargs)


def init_params(key, input_size, hidden_size, output_size, dtype=jnp.float32):
    """Deterministic init mimicking nn.Linear default (uniform +-1/sqrt(fan_in)).

    Weights are stored transposed vs PyTorch: (in_features, out_features)."""
    k1, k2, k3, k4 = jax.random.split(key, 4)
    bound1 = 1.0 / jnp.sqrt(input_size)
    bound2 = 1.0 / jnp.sqrt(hidden_size)
    w1 = jax.random.uniform(k1, (input_size, hidden_size), dtype, -bound1, bound1)
    b1 = jax.random.uniform(k2, (hidden_size,), jnp.float32, -bound1, bound1)
    w2 = jax.random.uniform(k3, (hidden_size, output_size), dtype, -bound2, bound2)
    b2 = jax.random.uniform(k4, (output_size,), jnp.float32, -bound2, bound2)
    return w1, b1, w2, b2


# TODO(synk): Linear_QNet.save() (torch checkpoint I/O) is host-side and has no
# Pallas equivalent; only the forward pass is implemented here.

if __name__ == "__main__":
    key = jax.random.PRNGKey(0)
    # Canonical Linear_QNet sizes (snake DQN): 11 -> 256 -> 3, small batch.
    batch, input_size, hidden_size, output_size = 8, 11, 256, 3

    kx, kp = jax.random.split(key)
    x = jax.random.normal(kx, (batch, input_size), jnp.float32)
    w1, b1, w2, b2 = init_params(kp, input_size, hidden_size, output_size)

    # Reference in plain JAX (same semantics as the PyTorch forward).
    ref = jnp.maximum(x @ w1 + b1[None, :], 0.0) @ w2 + b2[None, :]

    # f32 path, params padded once, forward jitted (training-style usage).
    params = prepare_params(w1, b1, w2, b2)
    fwd = jax.jit(lambda xx: linear_qnet_forward(xx, params))
    out = jax.block_until_ready(fwd(x))
    assert out.shape == (batch, output_size)
    assert jnp.allclose(out, ref, atol=1e-5, rtol=1e-5)

    # 1-D single-state path (action selection).
    out1 = jax.block_until_ready(linear_qnet_forward(x[0], params))
    assert out1.shape == (output_size,)
    assert jnp.allclose(out1, ref[0], atol=1e-5, rtol=1e-5)

    # bf16 compute path (v6e/v7x MXU fast path), f32 accumulation inside.
    params_bf16 = prepare_params(w1, b1, w2, b2, compute_dtype=jnp.bfloat16)
    out_bf16 = jax.block_until_ready(linear_qnet_forward(x, params_bf16))
    assert out_bf16.shape == (batch, output_size)
    assert jnp.allclose(out_bf16.astype(jnp.float32), ref, atol=1e-1, rtol=1e-1)

    print("KERNEL_OK")
</pallas_src>

<mosaic_0001>
module attributes {stable_mosaic.version = 11 : i64} {
  func.func @qnet_kernel(%arg0: i32, %arg1: memref<8x11xf32, #tpu.memory_space<vmem>>, %arg2: memref<11x256xf32, #tpu.memory_space<vmem>>, %arg3: memref<1x256xf32, #tpu.memory_space<vmem>>, %arg4: memref<256x128xf32, #tpu.memory_space<vmem>>, %arg5: memref<1x128xf32, #tpu.memory_space<vmem>>, %arg6: memref<8x128xf32, #tpu.memory_space<vmem>>) attributes {dimension_semantics = [#tpu.dimension_semantics<parallel>], iteration_bounds = array<i64: 1>, scalar_prefetch = 0 : i64, scratch_operands = 0 : i64, tpu.core_type = #tpu.core_type<tc>, window_params = [{transform_indices = @transform_0, window_bounds = array<i64: 8, 11>}, {pipeline_mode = #tpu.pipeline_mode<synchronous>, transform_indices = @transform_1, window_bounds = array<i64: 11, 256>}, {pipeline_mode = #tpu.pipeline_mode<synchronous>, transform_indices = @transform_2, window_bounds = array<i64: 1, 256>}, {pipeline_mode = #tpu.pipeline_mode<synchronous>, transform_indices = @transform_3, window_bounds = array<i64: 256, 128>}, {pipeline_mode = #tpu.pipeline_mode<synchronous>, transform_indices = @transform_4, window_bounds = array<i64: 1, 128>}, {transform_indices = @transform_5, window_bounds = array<i64: 8, 128>}]} {
    %c0 = arith.constant 0 : index
    %c0_0 = arith.constant 0 : index
    %0 = vector.load %arg1[%c0, %c0_0] : memref<8x11xf32, #tpu.memory_space<vmem>>, vector<8x11xf32>
    %c0_1 = arith.constant 0 : index
    %c0_2 = arith.constant 0 : index
    %1 = vector.load %arg2[%c0_1, %c0_2] : memref<11x256xf32, #tpu.memory_space<vmem>>, vector<11x256xf32>
    %cst = arith.constant dense<0.000000e+00> : vector<8x256xf32>
    %2 = tpu.matmul %0, %1, %cst {dimension_numbers = #tpu.dot_dimension_numbers<[1], [0], [0], [1], [0, 0, 1, 1], [], []>} : vector<8x11xf32>, vector<11x256xf32>, vector<8x256xf32> -> vector<8x256xf32>
    %c0_3 = arith.constant 0 : index
    %c0_4 = arith.constant 0 : index
    %3 = vector.load %arg3[%c0_3, %c0_4] : memref<1x256xf32, #tpu.memory_space<vmem>>, vector<1x256xf32>
    %4 = vector.broadcast %3 : vector<1x256xf32> to vector<8x256xf32>
    %5 = arith.addf %2, %4 : vector<8x256xf32>
    %cst_5 = arith.constant 0.000000e+00 : f32
    %6 = vector.broadcast %cst_5 : f32 to vector<8x256xf32>
    %7 = arith.maximumf %5, %6 : vector<8x256xf32>
    %c0_6 = arith.constant 0 : index
    %c0_7 = arith.constant 0 : index
    %8 = vector.load %arg4[%c0_6, %c0_7] : memref<256x128xf32, #tpu.memory_space<vmem>>, vector<256x128xf32>
    %cst_8 = arith.constant dense<0.000000e+00> : vector<8x128xf32>
    %9 = tpu.matmul %7, %8, %cst_8 {dimension_numbers = #tpu.dot_dimension_numbers<[1], [0], [0], [1], [0, 0, 1, 1], [], []>} : vector<8x256xf32>, vector<256x128xf32>, vector<8x128xf32> -> vector<8x128xf32>
    %c0_9 = arith.constant 0 : index
    %c0_10 = arith.constant 0 : index
    %10 = vector.load %arg5[%c0_9, %c0_10] : memref<1x128xf32, #tpu.memory_space<vmem>>, vector<1x128xf32>
    %11 = vector.broadcast %10 : vector<1x128xf32> to vector<8x128xf32>
    %12 = arith.addf %9, %11 : vector<8x128xf32>
    %c0_11 = arith.constant 0 : index
    %c0_12 = arith.constant 0 : index
    %13 = vector.load %arg6[%c0_11, %c0_12] : memref<8x128xf32, #tpu.memory_space<vmem>>, vector<8x128xf32>
    tpu.vector_store %arg6[%c0_11, %c0_12], %12 {strides = array<i32>} : memref<8x128xf32, #tpu.memory_space<vmem>>, vector<8x128xf32>,
    return
  }
  func.func @transform_0(%arg0: i32) -> (i32, i32) {
    %c0_i32 = arith.constant 0 : i32
    %c0_i32_0 = arith.constant 0 : i32
    return %arg0, %c0_i32 : i32, i32
  }
  func.func @transform_1(%arg0: i32) -> (i32, i32) {
    %c0_i32 = arith.constant 0 : i32
    %c0_i32_0 = arith.constant 0 : i32
    %c0_i32_1 = arith.constant 0 : i32
    return %c0_i32, %c0_i32_0 : i32, i32
  }
  func.func @transform_2(%arg0: i32) -> (i32, i32) {
    %c0_i32 = arith.constant 0 : i32
    %c0_i32_0 = arith.constant 0 : i32
    %c0_i32_1 = arith.constant 0 : i32
    return %c0_i32, %c0_i32_0 : i32, i32
  }
  func.func @transform_3(%arg0: i32) -> (i32, i32) {
    %c0_i32 = arith.constant 0 : i32
    %c0_i32_0 = arith.constant 0 : i32
    %c0_i32_1 = arith.constant 0 : i32
    return %c0_i32, %c0_i32_0 : i32, i32
  }
  func.func @transform_4(%arg0: i32) -> (i32, i32) {
    %c0_i32 = arith.constant 0 : i32
    %c0_i32_0 = arith.constant 0 : i32
    %c0_i32_1 = arith.constant 0 : i32
    return %c0_i32, %c0_i32_0 : i32, i32
  }
  func.func @transform_5(%arg0: i32) -> (i32, i32) {
    %c0_i32 = arith.constant 0 : i32
    %c0_i32_0 = arith.constant 0 : i32
    return %arg0, %c0_i32 : i32, i32
  }
}

</mosaic_0001>

<bundles_post_ra>
// kernel: _lambda_.1
= control target key start
LH: loop header
LB: loop body
LE: loop exit
PB: predicated region body
PF: predicated region fallthrough
CT: control target
= control target key end

     0   :  { %10 = vsyncpa [#allocation3], 0  ;;  %s524_s0 = inlined_call_operand.hbm [shape: f32[8,11], index: 0, kind: input, shape index: {}]   ;;  %s525_s1 = inlined_call_operand.hbm [shape: f32[11,256], index: 1, kind: input, shape index: {}]   ;;  %s526_s2 = inlined_call_operand.vmem [shape: f32[1,256], index: 2, kind: input, shape index: {}]   ;;  %s527_s3 = inlined_call_operand.hbm [shape: f32[256,128], index: 3, kind: input, shape index: {}]   ;;  %s528_s4 = inlined_call_operand.vmem [shape: f32[1,128], index: 4, kind: input, shape index: {}]   ;;  %s529_s5 = inlined_call_operand.vmem [shape: f32[8,128], index: 5, kind: output, shape index: {}]  }
   0x1   :  { %11 = vsyncpa [#allocation5], 0  ;;  %s432_s18 = smov [#allocation4]   ;;  %s362_s22 = scalar_lea.hbm %s525_s1, 512 }
   0x2   :  { %s27_s19 = sshll.u32 %s432_s18, 4  ;;  %p363_p0 = scmp.ne.s32.totalorder %s525_s1, %s362_s22  ;;  %s28_s19 = int_to_ptr.vmem [resolvable:$true] %s27_s19 }
   0x3   :  { %p366_p1 = scmp.lt.u32.totalorder %s362_s22, %s525_s1 }
   0x5   :  { %p368_p2 = pnand %p366_p1, %p363_p0 }
   0x7   :  { %371 = shalt.err (!%p368_p2)
}
   0x8   :  { %s372_s27 = scalar_lea.vmem %s28_s19, 512  ;;  %p377_p4 = scmp.lt.s32.totalorder %s28_s19, %s28_s19 }
   0x9   :  { %p373_p3 = scmp.ne.s32.totalorder %s28_s19, %s372_s27  ;;  %p378_p5 = scmp.lt.s32.totalorder %s372_s27, %s372_s27 }
   0xb   :  { %p379_p6 = por %p378_p5, %p377_p4 }
   0xd   :  { %p380_p7 = pnand %p379_p6, %p373_p3 }
   0xf   :  { %383 = shalt.err (!%p380_p7)
}
  0x10   :  { %s433_s28 = smov 256   ;;  %s434_s29 = smov 16  }
  0x11   :  { %33 = dma.hbm_to_vmem [thread:$0]  %s525_s1, 512, %s28_s19, [#allocation5], %s433_s28, %s433_s28, %s434_s29  }
  0x12   :  { %s435_s7 = smov [#allocation2]   ;;  %s436_s9 = smov [#allocation6]  }
  0x13   :  { %s18_s8 = sshll.u32 %s435_s7, 4  ;;  %s41_s10 = sshll.u32 %s436_s9, 4  ;;  %s19_s8 = int_to_ptr.vmem [resolvable:$true] %s18_s8  ;;  %s42_s10 = int_to_ptr.vmem [resolvable:$true] %s41_s10 }
  0x14   :  { %s384_s13 = scalar_lea.hbm %s524_s0, 128 }
  0x15   :  { %p385_p8 = scmp.ne.s32.totalorder %s524_s0, %s384_s13  ;;  %p388_p9 = scmp.lt.u32.totalorder %s384_s13, %s524_s0 }
  0x17   :  { %p390_p10 = pnand %p388_p9, %p385_p8 }
  0x19   :  { %393 = shalt.err (!%p390_p10)
}
  0x1a   :  { %s394_s1 = scalar_lea.vmem %s19_s8, 128  ;;  %p399_p12 = scmp.lt.s32.totalorder %s19_s8, %s19_s8 }
  0x1b   :  { %p395_p11 = scmp.ne.s32.totalorder %s19_s8, %s394_s1  ;;  %p400_p13 = scmp.lt.s32.totalorder %s394_s1, %s394_s1 }
  0x1d   :  { %p401_p0 = por %p400_p13, %p399_p12 }
  0x1f   :  { %p402_p1 = pnand %p401_p0, %p395_p11 }
  0x21   :  { %405 = shalt.err (!%p402_p1)
}
  0x22   :  { %21 = dma.hbm_to_vmem [thread:$0]  %s524_s0, 128, %s19_s8, [#allocation3]  }
  0x23   :  { %s406_s22 = scalar_lea.hbm %s527_s3, 4096 }
  0x24   :  { %p407_p2 = scmp.ne.s32.totalorder %s527_s3, %s406_s22  ;;  %p410_p3 = scmp.lt.u32.totalorder %s406_s22, %s527_s3 }
  0x26   :  { %p412_p4 = pnand %p410_p3, %p407_p2 }
  0x28   :  { %415 = shalt.err (!%p412_p4)
}
  0x29   :  { %s416_s27 = scalar_lea.vmem %s42_s10, 4096  ;;  %p421_p6 = scmp.lt.s32.totalorder %s42_s10, %s42_s10 }
  0x2a   :  { %p417_p5 = scmp.ne.s32.totalorder %s42_s10, %s416_s27  ;;  %p422_p7 = scmp.lt.s32.totalorder %s416_s27, %s416_s27 }
  0x2c   :  { %p423_p8 = por %p422_p7, %p421_p6 }
  0x2e   :  { %p424_p9 = pnand %p423_p8, %p417_p5 }
  0x30   :  { %427 = shalt.err (!%p424_p9)
}
  0x31   :  { %s437_s0 = smov 128   ;;  %s438_s28 = smov 8  }
  0x32   :  { %47 = dma.hbm_to_vmem [thread:$0]  %s527_s3, 4096, %s42_s10, [#allocation5], %s437_s0, %s437_s0, %s438_s28  }
  0x33   :  { %428 = dma.done.wait [#allocation3], 128  }
  0x34   :  { %429 = vsyncadd [#allocation3], 4294967168 }
  0x35   :  { %430 = dma.done.wait [#allocation5], 4608  }
  0x36   :  { %431 = vsyncadd [#allocation5], 4294962688  ;;  %v439_v0 = vmov 0.0   ;;  %vm80_vm0 = vcmask 1042432   ;;  %vm440_vm1 = vmmov 1   ;;  %v61_v2 = vld [vmem:[#allocation4 + $0x8] sm:$0xff]  ;;  %v66_v57 = vlaneseq }
  0x37   :  { %151 = vmatprep.mubr.f32.mxu0 %v439_v0  ;;  %vm507_vm2 = vmpackc.low %vm80_vm0, %vm440_vm1  ;;  %v63_v3 = vld [vmem:[#allocation4 + $0x18] sm:$0x7]  ;;  %v60_v4 = vld [vmem:[#allocation4] sm:$0xff]  ;;  %vm76_vm3 = vcmask 89088  }
  0x38   :  { %v315_v5 = vpack.c.bf16 %v63_v3, %v61_v2  ;;  %v62_v6 = vld [vmem:[#allocation4 + $0x10] sm:$0x7]  ;;  %v176_v7 = vld [vmem:[#allocation6 + $0x80] sm:$0xff]  ;;  %v59_v9 = vld [vmem:[#allocation2] sm:$0xff]  ;;  %v67_v58 = vshrl.u32 %v66_v57, 7 }
  0x39   :  { %v318_v8 = vpack.c.bf16 %v62_v6, %v60_v4  ;;  %v177_v10 = vld [vmem:[#allocation6 + $0x88] sm:$0xff]  ;;  %v160_v11 = vld [vmem:[#allocation6] sm:$0xff]  ;;  %v178_v15 = vld [vmem:[#allocation6 + $0x90] sm:$0xff] }
  0x3a   :  { %v161_v12 = vld [vmem:[#allocation6 + $0x8] sm:$0xff]  ;;  %317 = vmatprep.subr.msk.bf16.mxu0 %vm507_vm2, %v315_v5  ;;  %v321_v13 = vpack.c.bf16 %v177_v10, %v176_v7  ;;  %v179_v16 = vld [vmem:[#allocation6 + $0x98] sm:$0xff]  ;;  %v162_v17 = vld [vmem:[#allocation6 + $0x10] sm:$0xff]  ;;  %v68_v59 = vsub.s32 0, %v67_v58  ;;  %v72_v61 = vsub.s32 1, %v67_v58 }
  0x3b   :  { %v323_v14 = vpack.c.bf16 %v161_v12, %v160_v11  ;;  %320 = vmatpush1.bf16.msk.msra.mxu0 %vm507_vm2, %v318_v8  ;;  %v325_v18 = vpack.c.bf16 %v179_v16, %v178_v15  ;;  %v163_v19 = vld [vmem:[#allocation6 + $0x18] sm:$0xff]  ;;  %v180_v20 = vld [vmem:[#allocation6 + $0xa0] sm:$0xff]  ;;  %v181_v21 = vld [vmem:[#allocation6 + $0xa8] sm:$0xff] }
  0x3c   :  { %322 = vmatprep.subr.bf16.mxu1 %v321_v13  ;;  %v327_v22 = vpack.c.bf16 %v163_v19, %v162_v17  ;;  %v329_v23 = vpack.c.bf16 %v181_v21, %v180_v20  ;;  %v164_v24 = vld [vmem:[#allocation6 + $0x20] sm:$0xff]  ;;  %v165_v25 = vld [vmem:[#allocation6 + $0x28] sm:$0xff]  ;;  %v182_v26 = vld [vmem:[#allocation6 + $0xb0] sm:$0xff] }
  0x3d   :  { %324 = vmatpush3.bf16.msra.mxu1 %v323_v14  ;;  %v183_v27 = vld [vmem:[#allocation6 + $0xb8] sm:$0xff]  ;;  %v331_v28 = vpack.c.bf16 %v165_v25, %v164_v24  ;;  %v166_v30 = vld [vmem:[#allocation6 + $0x30] sm:$0xff]  ;;  %v184_v32 = vld [vmem:[#allocation6 + $0xc0] sm:$0xff] }
  0x3e   :  { %278 = vmatmul.mubr.msk.f32.vlgmr.msra.gmra.mrb[0].mxu0 %vm76_vm3, %v59_v9  ;;  %326 = vmatprep.subr.bf16.mxu1 %v325_v18  ;;  %v333_v29 = vpack.c.bf16 %v183_v27, %v182_v26  ;;  %v167_v31 = vld [vmem:[#allocation6 + $0x38] sm:$0xff]  ;;  %v185_v33 = vld [vmem:[#allocation6 + $0xc8] sm:$0xff]  ;;  %v168_v36 = vld [vmem:[#allocation6 + $0x40] sm:$0xff] }
  0x3f   :  { %v335_v34 = vpack.c.bf16 %v167_v31, %v166_v30  ;;  %v337_v35 = vpack.c.bf16 %v185_v33, %v184_v32  ;;  %v169_v37 = vld [vmem:[#allocation6 + $0x48] sm:$0xff]  ;;  %v186_v38 = vld [vmem:[#allocation6 + $0xd0] sm:$0xff]  ;;  %v187_v39 = vld [vmem:[#allocation6 + $0xd8] sm:$0xff] }
  0x40   :  { %v339_v40 = vpack.c.bf16 %v169_v37, %v168_v36  ;;  %v341_v41 = vpack.c.bf16 %v187_v39, %v186_v38  ;;  %v170_v42 = vld [vmem:[#allocation6 + $0x50] sm:$0xff]  ;;  %v171_v43 = vld [vmem:[#allocation6 + $0x58] sm:$0xff]  ;;  %v188_v44 = vld [vmem:[#allocation6 + $0xe0] sm:$0xff] }
  0x41   :  { %328 = vmatpush3.bf16.msra.mxu1 %v327_v22  ;;  %v189_v45 = vld [vmem:[#allocation6 + $0xe8] sm:$0xff]  ;;  %v343_v46 = vpack.c.bf16 %v171_v43, %v170_v42  ;;  %v172_v48 = vld [vmem:[#allocation6 + $0x60] sm:$0xff]  ;;  %v190_v51 = vld [vmem:[#allocation6 + $0xf0] sm:$0xff] }
  0x42   :  { %330 = vmatprep.subr.bf16.mxu1 %v329_v23  ;;  %v345_v47 = vpack.c.bf16 %v189_v45, %v188_v44  ;;  %v173_v49 = vld [vmem:[#allocation6 + $0x68] sm:$0xff]  ;;  %v191_v52 = vld [vmem:[#allocation6 + $0xf8] sm:$0xff]  ;;  %v174_v54 = vld [vmem:[#allocation6 + $0x70] sm:$0xff] }
  0x43   :  { %v347_v50 = vpack.c.bf16 %v173_v49, %v172_v48  ;;  %v349_v53 = vpack.c.bf16 %v191_v52, %v190_v51  ;;  %v175_v55 = vld [vmem:[#allocation6 + $0x78] sm:$0xff] }
  0x44   :  { %v351_v56 = vpack.c.bf16 %v175_v55, %v174_v54  ;;  %v64_v60 = vld [vmem:[%s526_s2] sm:$0x3] }
  0x45   :  { %332 = vmatpush3.bf16.msra.mxu1 %v331_v28  ;;  %v69_v62 = vrot.slane %v64_v60, %v68_v59  ;;  %v73_v63 = vrot.slane %v64_v60, %v72_v61  ;;  %v279_v7 = vld [vmem:[%s528_s4] ss:$0 sm:$0xff] }
  0x46   :  { %334 = vmatprep.subr.bf16.mxu1 %v333_v29 }
  0x49   :  { %336 = vmatpush3.bf16.msra.mxu1 %v335_v34 }
  0x4a   :  { %338 = vmatprep.subr.bf16.mxu1 %v337_v35 }
  0x4d   :  { %340 = vmatpush3.bf16.msra.mxu1 %v339_v40 }
  0x4e   :  { %342 = vmatprep.subr.bf16.mxu1 %v341_v41 }
  0x51   :  { %344 = vmatpush3.bf16.msra.mxu1 %v343_v46 }
  0x52   :  { %346 = vmatprep.subr.bf16.mxu1 %v345_v47 }
  0x55   :  { %348 = vmatpush3.bf16.msra.mxu1 %v347_v50 }
  0x56   :  { %350 = vmatprep.subr.bf16.mxu1 %v349_v53 }
  0x59   :  { %352 = vmatpush3.bf16.msra.mxu1 %v351_v56 }
 0x111   :  { %v153_v0 = vpop.f32.mrb[0].mxu0 }
 0x112   :  { %v154_v1 = vadd.f32 %v153_v0, %v69_v62  ;;  %v155_v2 = vpop.f32.mrb[1].mxu0 }
 0x113   :  { %v156_v3 = vadd.f32 %v155_v2, %v73_v63 }
 0x114   :  { %v158_v5 = vmax.f32 %v154_v1, 0.0 }
 0x115   :  { %v159_v4 = vmax.f32 %v156_v3, 0.0 }
 0x117   :  { %263 = vmatprep.mubr.f32.mxu1 %v159_v4 }
 0x118   :  { %264 = vmatmul.mubr.f32.vlgmr.msra.gmra.mrb[0].mxu1 %v158_v5 }
 0x1eb   :  { %v312_v6 = vpop.f32.mrb[0].mxu1 }
 0x1ec   :  { %v313_v8 = vpop.f32.mrb[1].mxu1 }
 0x1ed   :  { %v314_v9 = vadd.f32 %v313_v8, %v312_v6 }
 0x1ef   :  { %v266_v10 = vadd.f32 %v314_v9, %v279_v7 }
 0x1f1   :  { %269 = vst [vmem:[%s529_s5] sm:$0xff] %v266_v10 }
 0x1f2   :  { %274 = vsyncpa [#allocation3], 1 }
 0x1f3   :  { %275 = vsyncpa [#allocation5], 1 }

</bundles_post_ra>
